<compile_context>
chip_gen: v5e
topology: v5e:2x2
jax: 0.10.0
libtpu: 0.0.40
codegen_flags: <defaults>
</compile_context>

<pallas_src>
import functools

import jax
import jax.numpy as jnp
from jax import lax
from jax.experimental import pallas as pl
from jax.experimental.pallas import tpu as pltpu


def _round_up(x, m):
    return ((x + m - 1) // m) * m


def _fxp_quantize(x, total_bits, frac_bits):
    # elasticai FixedPointArithmetics.quantize == round(clamp(x)) onto the
    # fixed-point grid with resolution 2^-frac_bits and two's-complement range.
    scale = float(2 ** frac_bits)
    min_r = -(2 ** (total_bits - 1)) / scale
    max_r = (2 ** (total_bits - 1) - 1) / scale
    x = jnp.clip(x, min_r, max_r)
    return jnp.round(x * scale) / scale


# ---------- pass 1: conv (+ bias via ones-channel) + quantize + masked stats ----------
def _conv_stats_kernel(x_ref, w_ref, y_ref, stats_ref, *,
                       kernel_size, stride, l_out, lp_out, bb, n_batch,
                       total_bits, frac_bits):
    t = pl.program_id(0)
    c_in_pad, tn_in = x_ref.shape
    c_out_pad, tn_out = y_ref.shape

    x = x_ref[...]
    if kernel_size > 1:
        # Zero-extend by a lane-aligned chunk so every tap's static slice stays in
        # range; only discarded pad output columns ever read the extension.
        pad_w = _round_up(kernel_size - 1, 128)
        x_ext = jnp.concatenate(
            [x, jnp.zeros((c_in_pad, pad_w), dtype=jnp.float32)], axis=1)
    else:
        x_ext = x

    # Conv1d as K accumulated (C_out_pad, C_in_pad) @ (C_in_pad, TN) MXU matmuls
    # over shifted taps built in VMEM (no HBM im2col).  Bias is folded in via the
    # ones-channel of x and the corresponding column of w (tap k=0).
    acc = jnp.zeros((c_out_pad, tn_out), jnp.float32)
    for k in range(kernel_size):
        if stride == 1:
            xk = x_ext[:, k:k + tn_out]
        else:
            xk = x_ext[:, k:k + (tn_out - 1) * stride + 1:stride]
        acc = acc + jnp.dot(w_ref[k], xk, preferred_element_type=jnp.float32)

    y = _fxp_quantize(acc, total_bits, frac_bits)        # quantized conv output
    y_ref[...] = y

    # Single-sweep masked statistics: per-channel sum and sum-of-squares over the
    # valid (non-pad) columns only, accumulated across the "arbitrary" grid axis.
    col = lax.broadcasted_iota(jnp.int32, (c_out_pad, tn_out), 1)
    valid = col < l_out                                   # batch slot 0 of this tile
    for j in range(1, bb):
        lo = j * lp_out
        valid = valid | ((col >= lo) & (col < lo + l_out))
    # drop whole pad batch slots (global batch index >= n_batch)
    valid = valid & (col < (n_batch - t * bb) * lp_out)
    yv = jnp.where(valid, y, 0.0)
    s = jnp.sum(yv, axis=1, keepdims=True)
    ss = jnp.sum(yv * yv, axis=1, keepdims=True)
    su = jnp.concatenate([s, ss], axis=1)                 # (c_out_pad, 2)

    @pl.when(t == 0)
    def _():
        stats_ref[...] = su

    @pl.when(t > 0)
    def _():
        stats_ref[...] = stats_ref[...] + su


# ---------------- pass 2: folded batch-norm affine + final quantize ------------------
def _bn_apply_kernel(y_ref, sc_ref, o_ref, *, total_bits, frac_bits):
    scale = sc_ref[:, 0:1]                                # (c_out_pad, 1)
    shift = sc_ref[:, 1:2]
    o_ref[...] = _fxp_quantize(y_ref[...] * scale + shift, total_bits, frac_bits)


def fp_batch_normed_conv1d(inputs, conv_w, conv_b, bn_gamma, bn_beta, *,
                           in_channels, kernel_size, total_bits, frac_bits,
                           stride=1, padding=0, bn_eps=1e-5, column_tile=1024):
    has_batches = inputs.ndim == 2
    x = inputs if has_batches else inputs[None]
    batch = x.shape[0]
    x = x.reshape(batch, in_channels, -1)                 # (B, C_in, L)
    length = x.shape[-1]
    l_pad = length + 2 * padding
    l_out = (l_pad - kernel_size) // stride + 1
    c_out = conv_w.shape[0]

    # ---- padded, lane-dense layout (plain-JAX plumbing, ~1x input bytes) ----
    c_in_pad = _round_up(in_channels + 1, 8)      # +1 ones-row folds conv bias into matmul
    c_out_pad = _round_up(c_out, 8)
    lp_in = _round_up(max(l_pad, l_out * stride, 1), 128 * stride)  # per-batch input slot
    lp_out = lp_in // stride                                        # per-batch output slot (x128)

    # batch items per column tile: aim for ~1K output lanes, keep >=2 grid steps when possible
    bb = max(1, min(max(1, column_tile // lp_out), max(1, batch // 2)))
    grid_t = -(-batch // bb)
    b_pad = grid_t * bb
    tn_in, tn_out = bb * lp_in, bb * lp_out
    n_in, n_out = b_pad * lp_in, b_pad * lp_out

    x_slots = jnp.zeros((c_in_pad, b_pad, lp_in), jnp.float32)
    x_slots = x_slots.at[:in_channels, :batch, padding:padding + length].set(
        jnp.transpose(x.astype(jnp.float32), (1, 0, 2)))
    x_slots = x_slots.at[in_channels, :, :].set(1.0)      # ones channel (bias)
    x_slots = x_slots.reshape(c_in_pad, n_in)

    # quantize parameters once (hoisted out of the per-tile body)
    w_q = _fxp_quantize(conv_w.astype(jnp.float32), total_bits, frac_bits)
    b_q = _fxp_quantize(conv_b.astype(jnp.float32), total_bits, frac_bits)
    w_aug = jnp.zeros((kernel_size, c_out_pad, c_in_pad), jnp.float32)
    w_aug = w_aug.at[:, :c_out, :in_channels].set(jnp.transpose(w_q, (2, 0, 1)))
    w_aug = w_aug.at[0, :c_out, in_channels].set(b_q)     # bias lives in tap 0, ones-channel column

    kernel1 = functools.partial(
        _conv_stats_kernel, kernel_size=kernel_size, stride=stride,
        l_out=l_out, lp_out=lp_out, bb=bb, n_batch=batch,
        total_bits=total_bits, frac_bits=frac_bits)

    conv_q, stats = pl.pallas_call(
        kernel1,
        grid=(grid_t,),
        in_specs=[
            pl.BlockSpec((c_in_pad, tn_in), lambda t: (0, t)),
            pl.BlockSpec((kernel_size, c_out_pad, c_in_pad), lambda t: (0, 0, 0)),
        ],
        out_specs=[
            pl.BlockSpec((c_out_pad, tn_out), lambda t: (0, t)),
            pl.BlockSpec((c_out_pad, 2), lambda t: (0, 0)),   # resident stats accumulator
        ],
        out_shape=[
            jax.ShapeDtypeStruct((c_out_pad, n_out), jnp.float32),
            jax.ShapeDtypeStruct((c_out_pad, 2), jnp.float32),
        ],
        compiler_params=pltpu.CompilerParams(
            dimension_semantics=("arbitrary",),       # stats accumulate across this axis
            vmem_limit_bytes=32 * 1024 * 1024),
    )(x_slots, w_aug)

    # ---- fold BatchNorm into one per-channel affine (tiny (C_out,) math) ----
    count = float(batch * l_out)                          # true count: pads excluded
    mean = stats[:, 0] / count
    var = jnp.maximum(stats[:, 1] / count - mean * mean, 0.0)   # biased variance
    gamma_p = jnp.zeros((c_out_pad,), jnp.float32).at[:c_out].set(
        bn_gamma.astype(jnp.float32))
    beta_p = jnp.zeros((c_out_pad,), jnp.float32).at[:c_out].set(
        bn_beta.astype(jnp.float32))
    scale = gamma_p * lax.rsqrt(var + bn_eps)
    shift = beta_p - mean * scale
    scshift = jnp.stack([scale, shift], axis=1)           # (c_out_pad, 2)

    kernel2 = functools.partial(_bn_apply_kernel,
                                total_bits=total_bits, frac_bits=frac_bits)
    out_full = pl.pallas_call(
        kernel2,
        grid=(grid_t,),
        in_specs=[
            pl.BlockSpec((c_out_pad, tn_out), lambda t: (0, t)),
            pl.BlockSpec((c_out_pad, 2), lambda t: (0, 0)),
        ],
        out_specs=pl.BlockSpec((c_out_pad, tn_out), lambda t: (0, t)),
        out_shape=jax.ShapeDtypeStruct((c_out_pad, n_out), jnp.float32),
        input_output_aliases={0: 0},                      # normalize in place over conv buffer
        compiler_params=pltpu.CompilerParams(
            dimension_semantics=("parallel",),
            vmem_limit_bytes=32 * 1024 * 1024),
    )(conv_q, scshift)

    # back to PyTorch NCW flatten order: (B, C_out*L_out)
    out = out_full.reshape(c_out_pad, b_pad, lp_out)[:c_out, :batch, :l_out]
    out = jnp.transpose(out, (1, 0, 2)).reshape(batch, c_out * l_out)
    return out if has_batches else out[0]


def _reference(inputs, conv_w, conv_b, bn_gamma, bn_beta, *,
               in_channels, kernel_size, total_bits, frac_bits,
               stride, padding, bn_eps):
    # pure-JAX reference mirroring the PyTorch forward (training-mode BN).
    B = inputs.shape[0]
    x = inputs.reshape(B, in_channels, -1)
    wq = _fxp_quantize(conv_w, total_bits, frac_bits)
    bq = _fxp_quantize(conv_b, total_bits, frac_bits)
    y = lax.conv_general_dilated(
        x, wq, window_strides=(stride,), padding=[(padding, padding)],
        dimension_numbers=("NCH", "OIH", "NCH"))
    y = y + bq[None, :, None]
    y = _fxp_quantize(y, total_bits, frac_bits)
    mean = jnp.mean(y, axis=(0, 2), keepdims=True)
    var = jnp.mean(jnp.square(y - mean), axis=(0, 2), keepdims=True)
    yn = (y - mean) * lax.rsqrt(var + bn_eps)
    yn = yn * bn_gamma[None, :, None] + bn_beta[None, :, None]
    yn = _fxp_quantize(yn, total_bits, frac_bits)
    return yn.reshape(B, -1)


if __name__ == "__main__":
    # module config (matches FPBatchNormedConv1d.__init__ shapes)
    total_bits, frac_bits = 8, 4
    in_channels, out_channels = 4, 8
    signal_length = 16
    kernel_size = 3
    stride, padding = 1, 1
    bn_eps = 1e-5
    batch = 2

    key = jax.random.PRNGKey(0)
    k1, k2, k3, k4, k5 = jax.random.split(key, 5)
    fan_in = in_channels * kernel_size
    bound = 1.0 / (fan_in ** 0.5)
    conv_w = jax.random.uniform(k1, (out_channels, in_channels, kernel_size),
                                jnp.float32, -bound, bound)
    conv_b = jax.random.uniform(k2, (out_channels,), jnp.float32, -bound, bound)
    bn_gamma = 1.0 + 0.1 * jax.random.normal(k3, (out_channels,), jnp.float32)
    bn_beta = 0.1 * jax.random.normal(k4, (out_channels,), jnp.float32)

    inputs = jax.random.normal(k5, (batch, in_channels * signal_length), jnp.float32)

    fwd = jax.jit(functools.partial(
        fp_batch_normed_conv1d,
        in_channels=in_channels, kernel_size=kernel_size,
        total_bits=total_bits, frac_bits=frac_bits,
        stride=stride, padding=padding, bn_eps=bn_eps))

    out = fwd(inputs, conv_w, conv_b, bn_gamma, bn_beta)
    out = jax.block_until_ready(out)

    ref = _reference(inputs, conv_w, conv_b, bn_gamma, bn_beta,
                     in_channels=in_channels, kernel_size=kernel_size,
                     total_bits=total_bits, frac_bits=frac_bits,
                     stride=stride, padding=padding, bn_eps=bn_eps)
    assert out.shape == (batch, out_channels * signal_length)
    # tolerance of one fixed-point LSB (accumulation-order rounding near ties)
    assert jnp.max(jnp.abs(out - ref)) <= (2.0 ** -frac_bits) + 1e-6

    print("KERNEL_OK")
</pallas_src>

<mosaic_0001>
module attributes {stable_mosaic.version = 11 : i64} {
  func.func @_conv_stats_kernel(%arg0: i32, %arg1: memref<8x128xf32, #tpu.memory_space<vmem>>, %arg2: memref<3x8x8xf32, #tpu.memory_space<vmem>>, %arg3: memref<8x128xf32, #tpu.memory_space<vmem>>, %arg4: memref<8x2xf32, #tpu.memory_space<vmem>>) attributes {dimension_semantics = [#tpu.dimension_semantics<arbitrary>], iteration_bounds = array<i64: 2>, scalar_prefetch = 0 : i64, scratch_operands = 0 : i64, tpu.core_type = #tpu.core_type<tc>, window_params = [{transform_indices = @transform_0, window_bounds = array<i64: 8, 128>}, {pipeline_mode = #tpu.pipeline_mode<synchronous>, transform_indices = @transform_1, window_bounds = array<i64: 3, 8, 8>}, {transform_indices = @transform_2, window_bounds = array<i64: 8, 128>}, {pipeline_mode = #tpu.pipeline_mode<synchronous>, transform_indices = @transform_3, window_bounds = array<i64: 8, 2>}]} {
    %c0 = arith.constant 0 : index
    %c0_0 = arith.constant 0 : index
    %0 = vector.load %arg1[%c0, %c0_0] : memref<8x128xf32, #tpu.memory_space<vmem>>, vector<8x128xf32>
    %cst = arith.constant 0.000000e+00 : f32
    %1 = vector.broadcast %cst : f32 to vector<8x128xf32>
    %2 = tpu.concatenate %0, %1 in 1 : vector<8x128xf32>, vector<8x128xf32> -> vector<8x256xf32>
    %cst_1 = arith.constant 0.000000e+00 : f32
    %3 = vector.broadcast %cst_1 : f32 to vector<8x128xf32>
    %4 = vector.extract_strided_slice %2 {offsets = [0, 0], sizes = [8, 128], strides = [1, 1]} : vector<8x256xf32> to vector<8x128xf32>
    %c0_2 = arith.constant 0 : index
    %c0_3 = arith.constant 0 : index
    %c0_4 = arith.constant 0 : index
    %5 = vector.load %arg2[%c0_2, %c0_3, %c0_4] : memref<3x8x8xf32, #tpu.memory_space<vmem>>, vector<1x8x8xf32>
    %6 = vector.shape_cast %5 : vector<1x8x8xf32> to vector<8x8xf32>
    %cst_5 = arith.constant dense<0.000000e+00> : vector<8x128xf32>
    %7 = tpu.matmul %6, %4, %cst_5 {dimension_numbers = #tpu.dot_dimension_numbers<[1], [0], [0], [1], [0, 0, 1, 1], [], []>} : vector<8x8xf32>, vector<8x128xf32>, vector<8x128xf32> -> vector<8x128xf32>
    %8 = arith.addf %3, %7 : vector<8x128xf32>
    %9 = vector.extract_strided_slice %2 {offsets = [0, 1], sizes = [8, 128], strides = [1, 1]} : vector<8x256xf32> to vector<8x128xf32>
    %c1 = arith.constant 1 : index
    %c0_6 = arith.constant 0 : index
    %c0_7 = arith.constant 0 : index
    %10 = vector.load %arg2[%c1, %c0_6, %c0_7] : memref<3x8x8xf32, #tpu.memory_space<vmem>>, vector<1x8x8xf32>
    %11 = vector.shape_cast %10 : vector<1x8x8xf32> to vector<8x8xf32>
    %cst_8 = arith.constant dense<0.000000e+00> : vector<8x128xf32>
    %12 = tpu.matmul %11, %9, %cst_8 {dimension_numbers = #tpu.dot_dimension_numbers<[1], [0], [0], [1], [0, 0, 1, 1], [], []>} : vector<8x8xf32>, vector<8x128xf32>, vector<8x128xf32> -> vector<8x128xf32>
    %13 = arith.addf %8, %12 : vector<8x128xf32>
    %14 = vector.extract_strided_slice %2 {offsets = [0, 2], sizes = [8, 128], strides = [1, 1]} : vector<8x256xf32> to vector<8x128xf32>
    %c2 = arith.constant 2 : index
    %c0_9 = arith.constant 0 : index
    %c0_10 = arith.constant 0 : index
    %15 = vector.load %arg2[%c2, %c0_9, %c0_10] : memref<3x8x8xf32, #tpu.memory_space<vmem>>, vector<1x8x8xf32>
    %16 = vector.shape_cast %15 : vector<1x8x8xf32> to vector<8x8xf32>
    %cst_11 = arith.constant dense<0.000000e+00> : vector<8x128xf32>
    %17 = tpu.matmul %16, %14, %cst_11 {dimension_numbers = #tpu.dot_dimension_numbers<[1], [0], [0], [1], [0, 0, 1, 1], [], []>} : vector<8x8xf32>, vector<8x128xf32>, vector<8x128xf32> -> vector<8x128xf32>
    %18 = arith.addf %13, %17 : vector<8x128xf32>
    %cst_12 = arith.constant -8.000000e+00 : f32
    %cst_13 = arith.constant 7.937500e+00 : f32
    %19 = vector.broadcast %cst_12 : f32 to vector<8x128xf32>
    %20 = arith.maximumf %19, %18 : vector<8x128xf32>
    %21 = vector.broadcast %cst_13 : f32 to vector<8x128xf32>
    %22 = arith.minimumf %21, %20 : vector<8x128xf32>
    %cst_14 = arith.constant 1.600000e+01 : f32
    %23 = vector.broadcast %cst_14 : f32 to vector<8x128xf32>
    %24 = arith.mulf %22, %23 : vector<8x128xf32>
    %25 = math.roundeven %24 : vector<8x128xf32>
    %cst_15 = arith.constant 1.600000e+01 : f32
    %26 = vector.broadcast %cst_15 : f32 to vector<8x128xf32>
    %27 = arith.divf %25, %26 : vector<8x128xf32>
    %c0_16 = arith.constant 0 : index
    %c0_17 = arith.constant 0 : index
    %28 = vector.load %arg3[%c0_16, %c0_17] : memref<8x128xf32, #tpu.memory_space<vmem>>, vector<8x128xf32>
    tpu.vector_store %arg3[%c0_16, %c0_17], %27 {strides = array<i32>} : memref<8x128xf32, #tpu.memory_space<vmem>>, vector<8x128xf32>,
    %29 = tpu.iota {dimensions = array<i32: 1>} : vector<8x128xi32>
    %c16_i32 = arith.constant 16 : i32
    %30 = vector.broadcast %c16_i32 : i32 to vector<8x128xi32>
    %31 = arith.cmpi slt, %29, %30 : vector<8x128xi32>
    %c1_i32 = arith.constant 1 : i32
    %32 = arith.muli %arg0, %c1_i32 : i32
    %c2_i32 = arith.constant 2 : i32
    %33 = arith.subi %c2_i32, %32 : i32
    %c128_i32 = arith.constant 128 : i32
    %34 = arith.muli %33, %c128_i32 : i32
    %35 = vector.broadcast %34 : i32 to vector<8x128xi32>
    %36 = arith.cmpi slt, %29, %35 : vector<8x128xi32>
    %37 = arith.andi %31, %36 : vector<8x128xi1>
    %cst_18 = arith.constant 0.000000e+00 : f32
    %38 = vector.broadcast %cst_18 : f32 to vector<8x128xf32>
    %39 = arith.select %37, %27, %38 : vector<8x128xi1>, vector<8x128xf32>
    %cst_19 = arith.constant dense<0.000000e+00> : vector<8xf32>
    %40 = vector.multi_reduction <add>, %39, %cst_19 [1] : vector<8x128xf32> to vector<8xf32>
    %41 = vector.shape_cast %40 : vector<8xf32> to vector<8x1xf32>
    %42 = arith.mulf %39, %39 : vector<8x128xf32>
    %cst_20 = arith.constant dense<0.000000e+00> : vector<8xf32>
    %43 = vector.multi_reduction <add>, %42, %cst_20 [1] : vector<8x128xf32> to vector<8xf32>
    %44 = vector.shape_cast %43 : vector<8xf32> to vector<8x1xf32>
    %45 = tpu.concatenate %41, %44 in 1 : vector<8x1xf32>, vector<8x1xf32> -> vector<8x2xf32>
    %c0_i32 = arith.constant 0 : i32
    %46 = arith.cmpi eq, %arg0, %c0_i32 : i32
    %47 = arith.extui %46 : i1 to i32
    %c0_i32_21 = arith.constant 0 : i32
    %48 = arith.cmpi ne, %47, %c0_i32_21 : i32
    scf.if %48 {
      %c0_24 = arith.constant 0 : index
      %c0_25 = arith.constant 0 : index
      %52 = vector.load %arg4[%c0_24, %c0_25] : memref<8x2xf32, #tpu.memory_space<vmem>>, vector<8x2xf32>
      tpu.vector_store %arg4[%c0_24, %c0_25], %45 {strides = array<i32>} : memref<8x2xf32, #tpu.memory_space<vmem>>, vector<8x2xf32>,
    } else {
    }
    %c0_i32_22 = arith.constant 0 : i32
    %49 = arith.cmpi sgt, %arg0, %c0_i32_22 : i32
    %50 = arith.extui %49 : i1 to i32
    %c0_i32_23 = arith.constant 0 : i32
    %51 = arith.cmpi ne, %50, %c0_i32_23 : i32
    scf.if %51 {
      %c0_24 = arith.constant 0 : index
      %c0_25 = arith.constant 0 : index
      %52 = vector.load %arg4[%c0_24, %c0_25] : memref<8x2xf32, #tpu.memory_space<vmem>>, vector<8x2xf32>
      %53 = arith.addf %52, %45 : vector<8x2xf32>
      %c0_26 = arith.constant 0 : index
      %c0_27 = arith.constant 0 : index
      %54 = vector.load %arg4[%c0_26, %c0_27] : memref<8x2xf32, #tpu.memory_space<vmem>>, vector<8x2xf32>
      tpu.vector_store %arg4[%c0_26, %c0_27], %53 {strides = array<i32>} : memref<8x2xf32, #tpu.memory_space<vmem>>, vector<8x2xf32>,
    } else {
    }
    return
  }
  func.func @transform_0(%arg0: i32) -> (i32, i32) {
    %c0_i32 = arith.constant 0 : i32
    %c0_i32_0 = arith.constant 0 : i32
    return %c0_i32, %arg0 : i32, i32
  }
  func.func @transform_1(%arg0: i32) -> (i32, i32, i32) {
    %c0_i32 = arith.constant 0 : i32
    %c0_i32_0 = arith.constant 0 : i32
    %c0_i32_1 = arith.constant 0 : i32
    %c0_i32_2 = arith.constant 0 : i32
    return %c0_i32, %c0_i32_0, %c0_i32_1 : i32, i32, i32
  }
  func.func @transform_2(%arg0: i32) -> (i32, i32) {
    %c0_i32 = arith.constant 0 : i32
    %c0_i32_0 = arith.constant 0 : i32
    return %c0_i32, %arg0 : i32, i32
  }
  func.func @transform_3(%arg0: i32) -> (i32, i32) {
    %c0_i32 = arith.constant 0 : i32
    %c0_i32_0 = arith.constant 0 : i32
    %c0_i32_1 = arith.constant 0 : i32
    return %c0_i32, %c0_i32_0 : i32, i32
  }
}

module attributes {stable_mosaic.version = 11 : i64} {
  func.func @_bn_apply_kernel(%arg0: i32, %arg1: memref<8x128xf32, #tpu.memory_space<vmem>>, %arg2: memref<8x2xf32, #tpu.memory_space<vmem>>, %arg3: memref<8x128xf32, #tpu.memory_space<vmem>>) attributes {dimension_semantics = [#tpu.dimension_semantics<parallel>], iteration_bounds = array<i64: 2>, scalar_prefetch = 0 : i64, scratch_operands = 0 : i64, tpu.core_type = #tpu.core_type<tc>, window_params = [{transform_indices = @transform_0, window_bounds = array<i64: 8, 128>}, {pipeline_mode = #tpu.pipeline_mode<synchronous>, transform_indices = @transform_1, window_bounds = array<i64: 8, 2>}, {transform_indices = @transform_2, window_bounds = array<i64: 8, 128>}]} {
    %c0 = arith.constant 0 : index
    %c0_0 = arith.constant 0 : index
    %0 = vector.load %arg2[%c0, %c0_0] : memref<8x2xf32, #tpu.memory_space<vmem>>, vector<8x1xf32>
    %c0_1 = arith.constant 0 : index
    %c1 = arith.constant 1 : index
    %1 = vector.load %arg2[%c0_1, %c1] : memref<8x2xf32, #tpu.memory_space<vmem>>, vector<8x1xf32>
    %c0_2 = arith.constant 0 : index
    %c0_3 = arith.constant 0 : index
    %2 = vector.load %arg1[%c0_2, %c0_3] : memref<8x128xf32, #tpu.memory_space<vmem>>, vector<8x128xf32>
    %3 = vector.broadcast %0 : vector<8x1xf32> to vector<8x128xf32>
    %4 = arith.mulf %2, %3 : vector<8x128xf32>
    %5 = vector.broadcast %1 : vector<8x1xf32> to vector<8x128xf32>
    %6 = arith.addf %4, %5 : vector<8x128xf32>
    %cst = arith.constant -8.000000e+00 : f32
    %cst_4 = arith.constant 7.937500e+00 : f32
    %7 = vector.broadcast %cst : f32 to vector<8x128xf32>
    %8 = arith.maximumf %7, %6 : vector<8x128xf32>
    %9 = vector.broadcast %cst_4 : f32 to vector<8x128xf32>
    %10 = arith.minimumf %9, %8 : vector<8x128xf32>
    %cst_5 = arith.constant 1.600000e+01 : f32
    %11 = vector.broadcast %cst_5 : f32 to vector<8x128xf32>
    %12 = arith.mulf %10, %11 : vector<8x128xf32>
    %13 = math.roundeven %12 : vector<8x128xf32>
    %cst_6 = arith.constant 1.600000e+01 : f32
    %14 = vector.broadcast %cst_6 : f32 to vector<8x128xf32>
    %15 = arith.divf %13, %14 : vector<8x128xf32>
    %c0_7 = arith.constant 0 : index
    %c0_8 = arith.constant 0 : index
    %16 = vector.load %arg3[%c0_7, %c0_8] : memref<8x128xf32, #tpu.memory_space<vmem>>, vector<8x128xf32>
    tpu.vector_store %arg3[%c0_7, %c0_8], %15 {strides = array<i32>} : memref<8x128xf32, #tpu.memory_space<vmem>>, vector<8x128xf32>,
    return
  }
  func.func @transform_0(%arg0: i32) -> (i32, i32) {
    %c0_i32 = arith.constant 0 : i32
    %c0_i32_0 = arith.constant 0 : i32
    return %c0_i32, %arg0 : i32, i32
  }
  func.func @transform_1(%arg0: i32) -> (i32, i32) {
    %c0_i32 = arith.constant 0 : i32
    %c0_i32_0 = arith.constant 0 : i32
    %c0_i32_1 = arith.constant 0 : i32
    return %c0_i32, %c0_i32_0 : i32, i32
  }
  func.func @transform_2(%arg0: i32) -> (i32, i32) {
    %c0_i32 = arith.constant 0 : i32
    %c0_i32_0 = arith.constant 0 : i32
    return %c0_i32, %arg0 : i32, i32
  }
}

</mosaic_0001>

<bundles_post_ra>
// kernel: fp_batch_normed_conv1d.3
= control target key start
LH: loop header
LB: loop body
LE: loop exit
PB: predicated region body
PF: predicated region fallthrough
CT: control target
= control target key end

     0   :  { %s276_s9 = smov 0   ;;  %s296_s0 = inlined_call_operand.vmem [shape: f32[8,256], index: 0, kind: input, shape index: {}, may-alias: {0,2}]   ;;  %s297_s1 = inlined_call_operand.vmem [shape: f32[8,2], index: 1, kind: input, shape index: {}]   ;;  %s298_s2 = inlined_call_operand.vmem [shape: f32[8,256], index: 2, kind: output, shape index: {}, may-alias: {0,2}]  }
   0x1 LB: > { %s218_s10 = sadd.s32 4294967295, %s256_s9   ;;  %p222_p0 = scmp.ge.s32.totalorder %s256_s9, 1  ;;  %s256_s9 = sphi %s276_s9, %s12_s9  }
   0x2   : > { %p111_p1 = scmp.lt.s32.totalorder %s256_s9, 3 }
   0x4   : > { %p112_p2 = pnand %p222_p0, %p111_p1 }
   0x5   : > { %p131_p3 = scmp.lt.s32.totalorder (!%p112_p2), %s218_s10, 1 }
   0x6   : > { %115 = sbr.rel (%p112_p2) target bundleno = 157 (0x9d), region = 28 }
   0xb   : > { %v139_v0 = vld [vmem:[%s297_s1] sm:$0xff]  ;;  %v258_v1 = vmov 0   ;;  %v259_v2 = vmov 1   ;;  %s300_s10 = smov (!%p131_p3, %s218_s10), 1  ;;  %v260_v3 = vmov 16.0  }
   0xc   : > { %246 = vset.pattern.permute.xlu0 %v258_v1  ;;  %s223_s13 = sshll.u32 %s300_s10, 3  ;;  %248 = vrcp.f32 %v260_v3 }
   0xd   : > { %143 = vperm.xlu0 %246, %v139_v0   ;;  %s134_s16 = scalar_lea.vmem %s296_s0, %s223_s13  ;;  %s138_s19 = scalar_lea.vmem %s298_s2, %s223_s13 }
   0xe   : > { %v140_v6 = vld [vmem:[%s134_s16] sm:$0xff] }
  0x12   : > { %v249_v5 = vpop.eup %248 }
  0x13   : > { %v157_v8 = vmul.f32 16.0, %v249_v5  ;;  %vm161_vm0 = vweird.f32 %v249_v5 }
  0x15   : > { %247 = vset.pattern.permute.xlu0 %v259_v2  ;;  %v158_v11 = vsub.f32 1.0, %v157_v8 }
  0x16   : > { %148 = vperm.xlu0 %247, %v139_v0  }
  0x17   : > { %v159_v14 = vmul.f32 %v249_v5, %v158_v11 }
  0x19   : > { %v160_v17 = vadd.f32 %v249_v5, %v159_v14 }
  0x1b   : > { %v162_v22 = vsel %vm161_vm0, %v249_v5, %v160_v17 }
  0x7f   : > { %v144_v4 = vpop.permute.xlu0 %143 }
  0x80   : > { %v146_v7 = vmul.f32 %v144_v4, %v140_v6 }
  0x88   : > { %v149_v9 = vpop.permute.xlu0 %148 }
  0x89   : > { %v151_v10 = vadd.f32 %v149_v9, %v146_v7 }
  0x8b   : > { %v152_v12 = vmax.f32 %v151_v10, -8.0 }
  0x8d   : > { %v153_v13 = vmin.f32 %v152_v12, 7.9375 }
  0x8f   : > { %v154_v15 = vmul.f32 16.0, %v153_v13 }
  0x91   : > { %v229_v16 = vcvt.f32.s32 %v154_v15  ;;  %v227_v19 = vand.u32 2147483647, %v154_v15  ;;  %v232_v21 = vand.u32 2147483648, %v154_v15 }
  0x93   : > { %v230_v18 = vcvt.s32.f32 %v229_v16  ;;  %vm228_vm1 = vcmp.lt.f32.partialorder %v227_v19, 8388608.0 }
  0x95   : > { %v231_v20 = vand.u32 2147483647, %v230_v18 }
  0x97   : > { %v233_v23 = vor.u32 %v232_v21, %v231_v20 }
  0x99   : > { %v234_v24 = vsel %vm228_vm1, %v233_v23, %v154_v15 }
  0x9a   : > { %v163_v25 = vmul.f32 %v234_v24, %v162_v22 }
  0x9c   : > { %164 = vst [vmem:[%s138_s19] sm:$0xff] %v163_v25 }
  0x9d PF: > { %s12_s9 = sadd.s32 1, %s256_s9  }
  0x9e   : > { %p9_p4 = scmp.ge.s32.totalorder %s12_s9, 4  }
  0xa0   :  { %11 = sbr.rel (!%p9_p4) target bundleno = 1 (0x1), region = 58 }

// kernel: fp_batch_normed_conv1d.2
= control target key start
LH: loop header
LB: loop body
LE: loop exit
PB: predicated region body
PF: predicated region fallthrough
CT: control target
= control target key end

     0   :  { %s439_s12 = smov 0   ;;  %s491_s0 = inlined_call_operand.vmem [shape: f32[8,256], index: 0, kind: input, shape index: {}]   ;;  %s492_s1 = inlined_call_operand.vmem [shape: f32[3,8,8], index: 1, kind: input, shape index: {}]   ;;  %s493_s2 = inlined_call_operand.vmem [shape: f32[8,256], index: 2, kind: output, shape index: {0}]   ;;  %s494_s3 = inlined_call_operand.vmem [shape: f32[8,2], index: 3, kind: output, shape index: {1}]  }
   0x1 LB: > { %s445_s13 = sadd.s32 4294967295, %s414_s12   ;;  %p363_p0 = scmp.ge.s32.totalorder %s414_s12, 1  ;;  %s414_s12 = sphi %s439_s12, %s14_s12  }
   0x2   : > { %p134_p1 = scmp.lt.s32.totalorder %s414_s12, 3 }
   0x4   : > { %p135_p2 = pnand %p363_p0, %p134_p1 }
   0x5   : > { %p156_p3 = scmp.lt.s32.totalorder (!%p135_p2), %s445_s13, 1  ;;  %s416_s19 = smov (!%p135_p2), 126  }
   0x6   : > { %138 = sbr.rel (%p135_p2) target bundleno = 431 (0x1af), region = 28  ;;  %s417_s20 = smov (!%p135_p2), 127  }
   0x7   : > { %s273_s27 = ssub.s32 (!%p135_p2), 2, %s445_s13  ;;  %p372_p4 = scmp.ne.s32.totalorder (!%p135_p2), %s445_s13, 0 }
   0x8   : > { %s371_s28 = sshll.u32 (!%p135_p2), %s273_s27, 7 }
   0xb   : > { %s451_s14 = scalar_select %p156_p3, %s445_s13, 1  ;;  %vm177_vm0 = vcmask 64512   ;;  %v165_v2 = vld [vmem:[%s492_s1] sm:$0xff]  ;;  %vm230_vm1 = vcmask 1031168   ;;  %v369_v6 = vld [vmem:[%s492_s1 + $0x10] sm:$0xff]  ;;  %vm174_vm2 = vcmask 1039360   ;;  %v270_v24 = vlaneseq }
   0xc   : > { %v366_v11 = vld [vmem:[%s492_s1 + $0x8] sm:$0xff]  ;;  %v418_v13 = vmov 16.0   ;;  %v275_v31 = vstv %s371_s28  ;;  %vm284_vm8 = vcmask 7168  }
   0xd   : > { %s364_s15 = sshll.u32 %s451_s14, 3  ;;  %406 = vrcp.f32 %v418_v13  ;;  %v271_v28 = vand.u32 127, %v270_v24 }
   0xe   : > { %s159_s18 = scalar_lea.vmem %s491_s0, %s364_s15  ;;  %s163_s4 = scalar_lea.vmem %s493_s2, %s364_s15 }
   0xf   : > { %v164_v0 = vld [vmem:[%s159_s18] sm:$0xff]  ;;  %vm272_vm4 = vcmp.lt.s32.totalorder %v271_v28, 16  ;;  %vm276_vm5 = vcmp.lt.s32.totalorder %v271_v28, %v275_v31 }
  0x10   : > { %v396_v1 = vpack.i.bf16 0.0, %v164_v0  ;;  %219 = vmatpush.msra.mxu1 %v164_v0  ;;  %vm277_vm7 = vmand %vm272_vm4, %vm276_vm5 }
  0x11   : > { %368 = vmatmul.msk.f32.vlgmr.msra.gmra.mxu1 %vm177_vm0, %v165_v2 }
  0x12   : > { %397 = vrot.lane.b32.xlu0 %v396_v1, %s416_s19 }
  0x13   : > { %v407_v14 = vpop.eup %406 }
  0x14   : > { %v262_v19 = vmul.f32 16.0, %v407_v14  ;;  %vm266_vm3 = vweird.f32 %v407_v14 }
  0x16   : > { %v263_v22 = vsub.f32 1.0, %v262_v19 }
  0x18   : > { %v264_v26 = vmul.f32 %v407_v14, %v263_v22 }
  0x1a   : > { %402 = vrot.lane.b32.xlu0 %v396_v1, %s417_s20  ;;  %v265_v30 = vadd.f32 %v407_v14, %v264_v26 }
  0x1c   : > { %v267_v36 = vsel %vm266_vm3, %v407_v14, %v265_v30 }
  0x84   : > { %v398_v3 = vpop.permute.xlu0 %397 }
  0x85   : > { %v400_v4 = vunpack.i.h.bf16 %v398_v3  ;;  %v399_v5 = vunpack.i.l.bf16 %v398_v3 }
  0x87   : > { %v231_v7 = vsel %vm230_vm1, %v399_v5, %v400_v4 }
  0x88   : > { %251 = vmatpush.msra.mxu2 %v231_v7 }
  0x89   : > { %370 = vmatmul.msk.f32.vlgmr.msra.gmra.mxu2 %vm177_vm0, %v369_v6 }
  0x8c   : > { %v403_v8 = vpop.permute.xlu0 %402 }
  0x8d   : > { %v405_v9 = vunpack.i.h.bf16 %v403_v8  ;;  %v404_v10 = vunpack.i.l.bf16 %v403_v8 }
  0x8e   : > { %v221_v15 = vpop.f32.mrf.mxu1 }
  0x8f   : > { %v175_v12 = vsel %vm174_vm2, %v404_v10, %v405_v9 }
  0x90   : > { %196 = vmatpush.msra.mxu0 %v175_v12 }
  0x91   : > { %367 = vmatmul.msk.f32.vlgmr.msra.gmra.mxu0 %vm177_vm0, %v366_v11 }
 0x10c   : > { %v253_v17 = vpop.f32.mrf.mxu2 }
 0x10e   : > { %v198_v16 = vpop.f32.mrf.mxu0 }
 0x10f   : > { %v222_v18 = vadd.f32 %v221_v15, %v198_v16 }
 0x111   : > { %v256_v20 = vadd.f32 %v253_v17, %v222_v18 }
 0x113   : > { %v257_v21 = vmax.f32 %v256_v20, -8.0 }
 0x115   : > { %v258_v23 = vmin.f32 %v257_v21, 7.9375 }
 0x117   : > { %v259_v25 = vmul.f32 16.0, %v258_v23 }
 0x119   : > { %v378_v27 = vcvt.f32.s32 %v259_v25  ;;  %v376_v32 = vand.u32 2147483647, %v259_v25  ;;  %v381_v34 = vand.u32 2147483648, %v259_v25 }
 0x11b   : > { %v379_v29 = vcvt.s32.f32 %v378_v27  ;;  %vm377_vm6 = vcmp.lt.f32.partialorder %v376_v32, 8388608.0 }
 0x11d   : > { %v380_v33 = vand.u32 2147483647, %v379_v29 }
 0x11f   : > { %v382_v35 = vor.u32 %v381_v34, %v380_v33 }
 0x121   : > { %v383_v37 = vsel %vm377_vm6, %v382_v35, %v259_v25 }
 0x122   : > { %v268_v38 = vmul.f32 %v383_v37, %v267_v36 }
 0x124   : > { %v278_v39 = vsel %vm277_vm7, %v268_v38, 0.0  ;;  %269 = vst [vmem:[%s163_s4] sm:$0xff] %v268_v38 }
 0x125   : > { %279 = vadd.xlane.f32.xlu1 %v278_v39  ;;  %v281_v40 = vmul.f32 %v278_v39, %v278_v39 }
 0x12d   : > { %282 = vadd.xlane.f32.xlu1 %v281_v40 }
 0x198   : > { %v280_v41 = vpop.xlane.xlu1 %279 }
 0x19d   : > { %289 = sbr.rel (%p372_p4) target bundleno = 420 (0x1a4), region = 32 }
 0x1a0   : > { %v283_v42 = vpop.xlane.xlu1 %282 }
 0x1a1   : > { %v285_v43 = vsel %vm284_vm8, %v280_v41, %v283_v42 }
 0x1a2   : > { %vm290_vm9 = vcmask 15360  }
 0x1a3   : > { %291 = vst.msk [vmem:[%s494_s3] sm:$0xff] %vm290_vm9, %v285_v43 }
 0x1a4 PF: > { %p373_p5 = scmp.le.s32.totalorder %s445_s13, 0 }
 0x1a6   : > { %295 = sbr.rel (%p373_p5) target bundleno = 431 (0x1af), region = 36 }
 0x1ab   : > { %v296_v44 = vld [vmem:[%s494_s3] sm:$0xff]  ;;  %vm298_vm10 = vcmask 15360  }
 0x1ac   : > { %v297_v45 = vadd.f32 %v296_v44, %v285_v43 }
 0x1ae   : > { %299 = vst.msk [vmem:[%s494_s3] sm:$0xff] %vm298_vm10, %v297_v45 }
 0x1af PF: > { %s14_s12 = sadd.s32 1, %s414_s12  }
 0x1b0   : > { %p11_p6 = scmp.ge.s32.totalorder %s14_s12, 4  }
 0x1b2   :  { %13 = sbr.rel (!%p11_p6) target bundleno = 1 (0x1), region = 76 }

</bundles_post_ra>
